<compile_context>
chip_gen: v5e
topology: v5e:2x2
jax: 0.10.0
libtpu: 0.0.40
codegen_flags: <defaults>
</compile_context>

<pallas_src>
import functools

import jax
import jax.numpy as jnp
from jax import lax
from jax.experimental import pallas as pl
from jax.experimental.pallas import tpu as pltpu


def _round_up(x, m):
    return (x + m - 1) // m * m


# ---------------------------------------------------------------------------
# Linear:  (M, K) @ (K, N) + (N,)
# ---------------------------------------------------------------------------

def _linear_kernel(x_ref, w_ref, b_ref, o_ref):
    x = x_ref[...].astype(jnp.bfloat16)                       # bf16 MXU operands
    acc = jnp.dot(x, w_ref[...], preferred_element_type=jnp.float32)
    o_ref[...] = (acc + b_ref[...]).astype(o_ref.dtype)


def linear(x, w, b, *, out_dtype=jnp.float32, tm=512):
    """x: (M, K) @ w: (K, N) + b: (N,) -> (M, N), tiled over rows."""
    M, K = x.shape
    N = w.shape[1]

    # Lane-dense output width: zero-pad N to a multiple of 128 (unmasked vst),
    # slice the padding off afterwards.
    Np = _round_up(N, 128)
    if Np != N:
        w = jnp.pad(w, ((0, 0), (0, Np - N)))
        b = jnp.pad(b, (0, Np - N))
    b2 = b.reshape(1, Np).astype(jnp.float32)

    # Row tile: biggest reasonable tile, but prefer >= 2 grid steps so v7x's
    # two TensorCores both get work ('parallel' axes are sharded across them).
    if M <= tm:
        tm_eff = M
        if M >= 16 and M % 16 == 0:
            tm_eff = M // 2
    else:
        tm_eff = tm
    Mp = _round_up(M, tm_eff)
    if Mp != M:
        x = jnp.pad(x, ((0, Mp - M), (0, 0)))

    out = pl.pallas_call(
        _linear_kernel,
        out_shape=jax.ShapeDtypeStruct((Mp, Np), out_dtype),
        grid=(Mp // tm_eff,),
        in_specs=[
            pl.BlockSpec((tm_eff, K), lambda i: (i, 0)),
            pl.BlockSpec((K, Np), lambda i: (0, 0)),
            pl.BlockSpec((1, Np), lambda i: (0, 0)),
        ],
        out_specs=pl.BlockSpec((tm_eff, Np), lambda i: (i, 0)),
        compiler_params=pltpu.CompilerParams(
            dimension_semantics=("parallel",),
            vmem_limit_bytes=48 * 1024 * 1024,
        ),
    )(x, w.astype(jnp.bfloat16), b2)

    if Mp != M or Np != N:
        out = out[:M, :N]
    return out


# ---------------------------------------------------------------------------
# Attention: softmax(q k^T * scale) v, flash-style, heads batched per step.
# ---------------------------------------------------------------------------

def _attn_kernel(q_ref, k_ref, v_ref, o_ref, m_sc, l_sc, acc_sc, *, scale):
    ki = pl.program_id(2)

    @pl.when(ki == 0)
    def _():
        m_sc[...] = jnp.full_like(m_sc, -jnp.inf)
        l_sc[...] = jnp.zeros_like(l_sc)
        acc_sc[...] = jnp.zeros_like(acc_sc)

    # Fold the softmax scale into q (tq*hd multiplies instead of tq*tk).
    q = q_ref[0] * scale                                      # (G, tq, hd) bf16
    k = k_ref[0]                                              # (G, tk, hd) bf16
    v = v_ref[0]                                              # (G, tk, hd) bf16

    # Contract the shared last axis directly — no k.T / per-head layout copy.
    s = lax.dot_general(q, k, (((2,), (2,)), ((0,), (0,))),
                        preferred_element_type=jnp.float32)   # (G, tq, tk) f32

    m_prev = m_sc[...]
    m_new = jnp.maximum(m_prev, jnp.max(s, axis=-1, keepdims=True))
    alpha = jnp.exp(m_prev - m_new)
    p = jnp.exp(s - m_new)                                    # f32 softmax math
    l_sc[...] = alpha * l_sc[...] + jnp.sum(p, axis=-1, keepdims=True)
    pv = lax.dot_general(p.astype(jnp.bfloat16), v,
                         (((2,), (1,)), ((0,), (0,))),
                         preferred_element_type=jnp.float32)  # (G, tq, hd)
    acc_sc[...] = alpha * acc_sc[...] + pv
    m_sc[...] = m_new

    @pl.when(ki == pl.num_programs(2) - 1)
    def _():
        inv_l = pl.reciprocal(l_sc[...], approx=True)         # EUP slot, ~free
        out = acc_sc[...] * inv_l                             # (G, tq, hd) f32
        # Write pre-transposed: fuses the module's .transpose(1, 2).
        o_ref[...] = jnp.swapaxes(out, 1, 2).astype(o_ref.dtype)


def _pick_q_tile(L, cap=256):
    # Output block's last dim is tq -> needs tq % 128 == 0 or tq == L.
    if L <= cap:
        return L
    for t in range(cap - cap % 128, 0, -128):
        if L % t == 0:
            return t
    return L  # TODO(synk): L with no 128-multiple divisor falls back to one full-length q tile.


def _pick_k_tile(L, cap=512):
    # k/v block's second-to-last dim is tk -> needs tk % 8 == 0 or tk == L.
    if L <= cap:
        return L
    for t in range(cap - cap % 8, 0, -8):
        if L % t == 0:
            return t
    return L


def _pick_head_block(BH, L, hd, tq, tk, budget_bytes=12 * 1024 * 1024):
    """Largest divisor G of BH whose per-step VMEM footprint fits the budget."""
    best = 1
    for g in range(1, BH + 1):
        if BH % g:
            continue
        io = 2 * 2 * g * (tq * hd + 2 * tk * hd + hd * tq)    # bf16 blocks, double-buffered
        scratch = 4 * g * tq * (hd + 2 * 128)                 # f32 acc + lane-padded m/l
        temps = 4 * g * tq * tk * 3                           # s / p / exp temporaries (f32)
        if io + scratch + temps <= budget_bytes:
            best = g
    return best


def attention(qkv3, scale):
    """qkv3: (3, BH, L, hd) bf16 -> attention output, pre-transposed to (BH, hd, L)."""
    _, BH, L, hd = qkv3.shape
    tq = _pick_q_tile(L)
    tk = _pick_k_tile(L)
    G = _pick_head_block(BH, L, hd, tq, tk)
    # Prefer >= 2 parallel grid steps (v7x has 2 TensorCores; free on v5e/v6e).
    if (BH // G) * (L // tq) < 2 and G % 2 == 0:
        G //= 2
    grid = (BH // G, L // tq, L // tk)

    kern = functools.partial(_attn_kernel, scale=float(scale))
    return pl.pallas_call(
        kern,
        out_shape=jax.ShapeDtypeStruct((BH, hd, L), qkv3.dtype),
        grid=grid,
        in_specs=[  # same qkv3 array passed 3x; leading block index picks the q/k/v plane
            pl.BlockSpec((1, G, tq, hd), lambda b, qi, ki: (0, b, qi, 0)),
            pl.BlockSpec((1, G, tk, hd), lambda b, qi, ki: (1, b, ki, 0)),
            pl.BlockSpec((1, G, tk, hd), lambda b, qi, ki: (2, b, ki, 0)),
        ],
        out_specs=pl.BlockSpec((G, hd, tq), lambda b, qi, ki: (b, 0, qi)),
        scratch_shapes=[
            pltpu.VMEM((G, tq, 1), jnp.float32),   # running max
            pltpu.VMEM((G, tq, 1), jnp.float32),   # running denom
            pltpu.VMEM((G, tq, hd), jnp.float32),  # running numerator
        ],
        compiler_params=pltpu.CompilerParams(
            dimension_semantics=("parallel", "parallel", "arbitrary"),
            vmem_limit_bytes=48 * 1024 * 1024,
        ),
    )(qkv3, qkv3, qkv3)


# ---------------------------------------------------------------------------
# Module forward (parameters follow nn.Linear conventions: W is (out, in))
# ---------------------------------------------------------------------------

def init_params(key, input_channels, hidden_channels):
    k1, k2, k3, k4 = jax.random.split(key, 4)
    return {
        "w_qkv": 0.1 * jax.random.normal(
            k1, (hidden_channels * 3, input_channels), jnp.float32),
        "b_qkv": 0.1 * jax.random.normal(
            k2, (hidden_channels * 3,), jnp.float32),
        "w_proj": 0.1 * jax.random.normal(
            k3, (input_channels, hidden_channels), jnp.float32),
        "b_proj": 0.1 * jax.random.normal(
            k4, (input_channels,), jnp.float32),
    }


def multihead_attention_3d(x, params, *, hidden_channels, num_heads):
    b, c, d, h, w = x.shape
    in_ch = params["w_qkv"].shape[1]
    assert w == in_ch and c == in_ch, (
        "module semantics require w == c == input_channels")
    assert hidden_channels % num_heads == 0
    hd = hidden_channels // num_heads
    L = d * h * w

    # qkv = nn.Linear(in, 3*hidden) applied along the trailing (w) axis.
    # bf16 output halves HBM traffic for the transpose + attention reads.
    x_flat = x.reshape(b * c * d * h, w)
    qkv = linear(x_flat, params["w_qkv"].T, params["b_qkv"],
                 out_dtype=jnp.bfloat16)                       # (b*c*d*h, 3*hidden)

    # .view(b,d,h,w,3,nh,hd).permute(4,0,5,1,6,2,3).view(3,-1,L,hd)
    # TODO(synk): the module's permute/view scrambles (d,h,w) with the head dim,
    # so this transpose is not block-affine and cannot be expressed as a
    # BlockSpec index_map; it materializes once in HBM (in bf16).
    qkv = qkv.reshape(b, d, h, w, 3, num_heads, hd)
    qkv = jnp.transpose(qkv, (4, 0, 5, 1, 6, 2, 3))            # (3, b, nh, d, hd, h, w)
    qkv3 = qkv.reshape(3, b * num_heads, L, hd)

    # softmax(q k^T / sqrt(hidden_channels)) v   (module scales by hidden, not hd)
    scale = 1.0 / (hidden_channels ** 0.5)
    attn_t = attention(qkv3, scale)                            # (b*nh, hd, L), pre-transposed

    # torch: .transpose(1,2).contiguous().view(b,nh,d,h,w,hd).view(b,-1,hidden)
    # attn_t already has the post-transpose memory order -> pure reshape.
    attn_rows = attn_t.reshape(b * L, hidden_channels)

    # proj = nn.Linear(hidden, in), then .view(b, c, d, h, w)
    out = linear(attn_rows, params["w_proj"].T, params["b_proj"],
                 out_dtype=jnp.float32)                        # (b*L, c)
    return out.reshape(b, c, d, h, w)


# ---------------------------------------------------------------------------
# Pure-JAX reference (same math, f32, no Pallas) for verification
# ---------------------------------------------------------------------------

def reference(x, params, *, hidden_channels, num_heads):
    b, c, d, h, w = x.shape
    hd = hidden_channels // num_heads
    L = d * h * w
    qkv = jnp.einsum("...k,nk->...n", x, params["w_qkv"]) + params["b_qkv"]
    qkv = qkv.reshape(b, d, h, w, 3, num_heads, hd)
    qkv = jnp.transpose(qkv, (4, 0, 5, 1, 6, 2, 3)).reshape(3, b * num_heads, L, hd)
    q, k, v = qkv[0], qkv[1], qkv[2]
    s = jnp.einsum("bij,bkj->bik", q, k) / (hidden_channels ** 0.5)
    p = jax.nn.softmax(s, axis=-1)
    attn = jnp.einsum("bik,bkj->bij", p, v)
    attn = jnp.transpose(attn, (0, 2, 1)).reshape(b, num_heads, d, h, w, hd)
    attn = attn.reshape(b, L, hidden_channels)
    out = jnp.einsum("blk,nk->bln", attn, params["w_proj"]) + params["b_proj"]
    return out.reshape(b, c, d, h, w)


# ---------------------------------------------------------------------------

if __name__ == "__main__":
    input_channels = 8      # == c == w (implicit requirement of the module)
    hidden_channels = 32
    num_heads = 4
    b, d, h = 2, 4, 8
    c = w = input_channels

    key = jax.random.PRNGKey(0)
    kx, kp = jax.random.split(key)
    x = jax.random.normal(kx, (b, c, d, h, w), jnp.float32)
    params = init_params(kp, input_channels, hidden_channels)

    out = multihead_attention_3d(
        x, params, hidden_channels=hidden_channels, num_heads=num_heads)
    out = jax.block_until_ready(out)

    ref = reference(
        x, params, hidden_channels=hidden_channels, num_heads=num_heads)
    assert out.shape == (b, c, d, h, w)
    # bf16 MXU operands + approximate reciprocal -> loose (but ample) tolerance.
    err = float(jnp.max(jnp.abs(out - ref)))
    assert err < 3e-2, f"mismatch vs reference: max abs err {err}"

    print("KERNEL_OK")
</pallas_src>

<mosaic_0001>
module attributes {stable_mosaic.version = 11 : i64} {
  func.func @_linear_kernel(%arg0: i32, %arg1: memref<256x8xf32, #tpu.memory_space<vmem>>, %arg2: memref<8x128xbf16, #tpu.memory_space<vmem>>, %arg3: memref<1x128xf32, #tpu.memory_space<vmem>>, %arg4: memref<256x128xbf16, #tpu.memory_space<vmem>>) attributes {dimension_semantics = [#tpu.dimension_semantics<parallel>], iteration_bounds = array<i64: 2>, scalar_prefetch = 0 : i64, scratch_operands = 0 : i64, tpu.core_type = #tpu.core_type<tc>, window_params = [{transform_indices = @transform_0, window_bounds = array<i64: 256, 8>}, {pipeline_mode = #tpu.pipeline_mode<synchronous>, transform_indices = @transform_1, window_bounds = array<i64: 8, 128>}, {pipeline_mode = #tpu.pipeline_mode<synchronous>, transform_indices = @transform_2, window_bounds = array<i64: 1, 128>}, {transform_indices = @transform_3, window_bounds = array<i64: 256, 128>}]} {
    %c0 = arith.constant 0 : index
    %c0_0 = arith.constant 0 : index
    %0 = vector.load %arg1[%c0, %c0_0] : memref<256x8xf32, #tpu.memory_space<vmem>>, vector<256x8xf32>
    %1 = arith.truncf %0 : vector<256x8xf32> to vector<256x8xbf16>
    %c0_1 = arith.constant 0 : index
    %c0_2 = arith.constant 0 : index
    %2 = vector.load %arg2[%c0_1, %c0_2] : memref<8x128xbf16, #tpu.memory_space<vmem>>, vector<8x128xbf16>
    %cst = arith.constant dense<0.000000e+00> : vector<256x128xf32>
    %3 = tpu.matmul %1, %2, %cst {dimension_numbers = #tpu.dot_dimension_numbers<[1], [0], [0], [1], [0, 0, 1, 1], [], []>} : vector<256x8xbf16>, vector<8x128xbf16>, vector<256x128xf32> -> vector<256x128xf32>
    %c0_3 = arith.constant 0 : index
    %c0_4 = arith.constant 0 : index
    %4 = vector.load %arg3[%c0_3, %c0_4] : memref<1x128xf32, #tpu.memory_space<vmem>>, vector<1x128xf32>
    %5 = vector.broadcast %4 : vector<1x128xf32> to vector<256x128xf32>
    %6 = arith.addf %3, %5 : vector<256x128xf32>
    %7 = arith.truncf %6 : vector<256x128xf32> to vector<256x128xbf16>
    %c0_5 = arith.constant 0 : index
    %c0_6 = arith.constant 0 : index
    %8 = vector.load %arg4[%c0_5, %c0_6] : memref<256x128xbf16, #tpu.memory_space<vmem>>, vector<256x128xbf16>
    tpu.vector_store %arg4[%c0_5, %c0_6], %7 {strides = array<i32>} : memref<256x128xbf16, #tpu.memory_space<vmem>>, vector<256x128xbf16>,
    return
  }
  func.func @transform_0(%arg0: i32) -> (i32, i32) {
    %c0_i32 = arith.constant 0 : i32
    %c0_i32_0 = arith.constant 0 : i32
    return %arg0, %c0_i32 : i32, i32
  }
  func.func @transform_1(%arg0: i32) -> (i32, i32) {
    %c0_i32 = arith.constant 0 : i32
    %c0_i32_0 = arith.constant 0 : i32
    %c0_i32_1 = arith.constant 0 : i32
    return %c0_i32, %c0_i32_0 : i32, i32
  }
  func.func @transform_2(%arg0: i32) -> (i32, i32) {
    %c0_i32 = arith.constant 0 : i32
    %c0_i32_0 = arith.constant 0 : i32
    %c0_i32_1 = arith.constant 0 : i32
    return %c0_i32, %c0_i32_0 : i32, i32
  }
  func.func @transform_3(%arg0: i32) -> (i32, i32) {
    %c0_i32 = arith.constant 0 : i32
    %c0_i32_0 = arith.constant 0 : i32
    return %arg0, %c0_i32 : i32, i32
  }
}

</mosaic_0001>

<bundles_post_ra>
// kernel: tpu_custom_call.1
= control target key start
LH: loop header
LB: loop body
LE: loop exit
PB: predicated region body
PF: predicated region fallthrough
CT: control target
= control target key end

     0   :  { %8 = vsyncpa [#allocation3], 0  ;;  %s962_s0 = inlined_call_operand.vmem [shape: f32[512,8], index: 0, kind: input, shape index: {}]   ;;  %s963_s1 = inlined_call_operand.vmem [shape: bf16[8,128], index: 1, kind: input, shape index: {}]   ;;  %s964_s2 = inlined_call_operand.vmem [shape: f32[1,128], index: 2, kind: input, shape index: {}]   ;;  %s965_s3 = inlined_call_operand.hbm [shape: bf16[512,128], index: 3, kind: output, shape index: {}]  }
   0x1   :  { %10 = vsyncpa [#allocation3 + $0x1], 0  ;;  %s765_s12 = smov 0   ;;  %s767_s13 = smov 0  }
   0x2   :  { %s769_s14 = smov 0   ;;  %s771_s15 = smov 0  }
   0x3 LB: > { %s786_s16 = sadd.s32 4294967295, %s741_s15   ;;  %s510_s17 = sadd.s32 4294967294, %s741_s15   ;;  %s741_s15 = sphi %s771_s15, %s971_s15   ;;  %s737_s14 = sphi %s769_s14, %s970_s14   ;;  %s733_s13 = sphi %s767_s13, %s969_s13   ;;  %s729_s12 = sphi %s765_s12, %s968_s12  }
   0x4   : > { %s790_s18 = sadd.s32 1, %s741_s15   ;;  %s91_s19 = sadd.s32 1, %s737_s14 }
   0x5   : > { %s88_s20 = ssub.s32 %s741_s15, %s790_s18  ;;  %p101_p0 = scmp.ne.s32.totalorder %s737_s14, %s733_s13 }
   0x6   : > { %p89_p1 = scmp.eq.s32.totalorder %s88_s20, 0  ;;  %p102_p2 = scmp.eq.s32.totalorder %s786_s16, 1 }
   0x7   : > { %p107_p3 = scmp.ne.s32.totalorder %s733_s13, %s729_s12  ;;  %p108_p4 = scmp.eq.s32.totalorder %s510_s17, 1 }
   0x8   : > { %s801_s21 = scalar_select %p89_p1, %s737_s14, %s91_s19  }
   0x9   : > { %p803_p5 = por %p102_p2, %p101_p0  ;;  %p807_p6 = por %p108_p4, %p107_p3 }
   0xa   : > { %p513_p7 = scmp.ge.s32.totalorder %s741_s15, 1  ;;  %p141_p8 = scmp.lt.s32.totalorder %s741_s15, 3 }
   0xc   : > { %p142_p9 = pnand %p513_p7, %p141_p8 }
   0xd   : > { %s515_s26 = sshll.u32 (!%p142_p9), %s786_s16, 5  ;;  %s162_s4 = sand.u32 (!%p142_p9), 1, %s733_s13  }
   0xe   : > { %145 = sbr.rel (%p142_p9) target bundleno = 224 (0xe0), region = 32  ;;  %p166_p10 = scmp.lt.s32.totalorder (!%p142_p9), %s515_s26, 63 }
   0xf   : > { %s514_s7 = sshll.u32 (!%p142_p9), %s162_s4, 7  ;;  %s538_s9 = sshll.u32 (!%p142_p9), %s786_s16, 7 }
  0x10   : > { %s882_s8 = scalar_lea.vmem (!%p142_p9), [#allocation2], %s514_s7  ;;  %s444_s17 = scalar_lea.hbm (!%p142_p9), %s965_s3, %s538_s9 }
  0x11   : > { %s445_s19 = sshll.u32 (!%p142_p9), %s882_s8, 4  ;;  %s447_s20 = sshll.u32 (!%p142_p9), %s444_s17, 4  ;;  %s446_s19 = int_to_ptr.vmem [resolvable:$true] %s445_s19  ;;  %s448_s20 = int_to_ptr.hbm [resolvable:$true] %s447_s20 }
  0x12   : > { %s433_s16 = scalar_lea.sflag (!%p142_p9), [#allocation3], %s162_s4  ;;  %s693_s24 = sshra.s32 (!%p142_p9), %s448_s20, 4  ;;  %s694_s24 = int_to_ptr.hbm [resolvable:$true] %s693_s24 }
  0x13   : > { %v221_v0 = vld [vmem:[%s963_s1] sm:$0xf]  ;;  %vm275_vm0 = vcmask 1043456   ;;  %s973_s26 = smov (!%p166_p10, %s515_s26), 63  ;;  %vm226_vm1 = vcmask 64512   ;;  %s695_s25 = scalar_lea.hbm %s694_s24, 128 }
  0x14   : > { %v277_v1 = vsel %vm275_vm0, %v221_v0, 0  ;;  %s516_s27 = sshll.u32 %s973_s26, 3  ;;  %v874_v52 = vld [vmem:[%s964_s2] ss:$0 sm:$0xff]  ;;  %p696_p11 = scmp.ne.s32.totalorder %s694_s24, %s695_s25 }
  0x15   : > { %286 = vmatpush.bf16.msra.mxu0 %v277_v1  ;;  %634 = vmatpush.bf16.msra.mxu1 %v277_v1  ;;  %s820_s30 = scalar_lea.vmem %s962_s0, %s516_s27  ;;  %s699_s28 = scalar_lea.hbm %s965_s3, 256 }
  0x16   : > { %635 = vmatpush.bf16.msra.mxu2 %v277_v1  ;;  %636 = vmatpush.bf16.msra.mxu3 %v277_v1  ;;  %v173_v2 = vld [vmem:[%s820_s30] sm:$0xff]  ;;  %v174_v3 = vld [vmem:[%s820_s30 + $0x8] sm:$0xff]  ;;  %v175_v14 = vld [vmem:[%s820_s30 + $0x10] sm:$0xff]  ;;  %p697_p12 = pnand %p696_p11, %p803_p5  ;;  %p700_p0 = scmp.lt.s32.totalorder %s694_s24, %s965_s3 }
  0x17   : > { %v181_v4 = vld [vmem:[%s820_s30 + $0x40] sm:$0xff]  ;;  %v205_v5 = vpack.c.bf16 %v174_v3, %v173_v2  ;;  %v182_v6 = vld [vmem:[%s820_s30 + $0x48] sm:$0xff]  ;;  %v176_v15 = vld [vmem:[%s820_s30 + $0x18] sm:$0xff]  ;;  %p701_p1 = scmp.lt.s32.totalorder %s699_s28, %s695_s25 }
  0x18   : > { %v189_v7 = vld [vmem:[%s820_s30 + $0x80] sm:$0xff]  ;;  %v190_v8 = vld [vmem:[%s820_s30 + $0x88] sm:$0xff]  ;;  %v209_v9 = vpack.c.bf16 %v182_v6, %v181_v4  ;;  %v183_v16 = vld [vmem:[%s820_s30 + $0x50] sm:$0xff]  ;;  %v206_v22 = vpack.c.bf16 %v176_v15, %v175_v14  ;;  %p698_p13 = pneg %p697_p12 }
  0x19   : > { %v213_v10 = vpack.c.bf16 %v190_v8, %v189_v7  ;;  %v197_v11 = vld [vmem:[%s820_s30 + $0xc0] sm:$0xff]  ;;  %v198_v12 = vld [vmem:[%s820_s30 + $0xc8] sm:$0xff]  ;;  %517 = vmatmul.msk.bf16.vlgmr.msra.gmra.mxu0 %vm226_vm1, %v205_v5  ;;  %v184_v17 = vld [vmem:[%s820_s30 + $0x58] sm:$0xff]  ;;  %p702_p2 = por %p701_p1, %p700_p0 }
  0x1a   : > { %v217_v13 = vpack.c.bf16 %v198_v12, %v197_v11  ;;  %521 = vmatmul.msk.bf16.vlgmr.msra.gmra.mxu1 %vm226_vm1, %v209_v9  ;;  %v191_v18 = vld [vmem:[%s820_s30 + $0x90] sm:$0xff]  ;;  %v192_v19 = vld [vmem:[%s820_s30 + $0x98] sm:$0xff]  ;;  %v210_v23 = vpack.c.bf16 %v184_v17, %v183_v16  ;;  %v177_v26 = vld [vmem:[%s820_s30 + $0x20] sm:$0xff] }
  0x1b   : > { %525 = vmatmul.msk.bf16.vlgmr.msra.gmra.mxu2 %vm226_vm1, %v213_v10  ;;  %v199_v20 = vld [vmem:[%s820_s30 + $0xd0] sm:$0xff]  ;;  %v200_v21 = vld [vmem:[%s820_s30 + $0xd8] sm:$0xff]  ;;  %v214_v24 = vpack.c.bf16 %v192_v19, %v191_v18  ;;  %v178_v27 = vld [vmem:[%s820_s30 + $0x28] sm:$0xff]  ;;  %p703_p3 = pnand %p702_p2, %p698_p13 }
  0x1c   : > { %529 = vmatmul.msk.bf16.vlgmr.msra.gmra.mxu3 %vm226_vm1, %v217_v13  ;;  %v218_v25 = vpack.c.bf16 %v200_v21, %v199_v20  ;;  %v185_v28 = vld [vmem:[%s820_s30 + $0x60] sm:$0xff]  ;;  %v186_v29 = vld [vmem:[%s820_s30 + $0x68] sm:$0xff]  ;;  %v207_v34 = vpack.c.bf16 %v178_v27, %v177_v26  ;;  %v179_v38 = vld [vmem:[%s820_s30 + $0x30] sm:$0xff] }
  0x1d   : > { %v193_v30 = vld [vmem:[%s820_s30 + $0xa0] sm:$0xff]  ;;  %v194_v31 = vld [vmem:[%s820_s30 + $0xa8] sm:$0xff]  ;;  %v211_v35 = vpack.c.bf16 %v186_v29, %v185_v28  ;;  %v180_v39 = vld [vmem:[%s820_s30 + $0x38] sm:$0xff] }
  0x1e   : > { %v201_v32 = vld [vmem:[%s820_s30 + $0xe0] sm:$0xff]  ;;  %v202_v33 = vld [vmem:[%s820_s30 + $0xe8] sm:$0xff]  ;;  %v215_v36 = vpack.c.bf16 %v194_v31, %v193_v30  ;;  %v187_v40 = vld [vmem:[%s820_s30 + $0x70] sm:$0xff]  ;;  %v208_v46 = vpack.c.bf16 %v180_v39, %v179_v38 }
  0x1f   : > { %v219_v37 = vpack.c.bf16 %v202_v33, %v201_v32  ;;  %v188_v41 = vld [vmem:[%s820_s30 + $0x78] sm:$0xff]  ;;  %v195_v42 = vld [vmem:[%s820_s30 + $0xb0] sm:$0xff] }
  0x20   : > { %v196_v43 = vld [vmem:[%s820_s30 + $0xb8] sm:$0xff]  ;;  %v203_v44 = vld [vmem:[%s820_s30 + $0xf0] sm:$0xff]  ;;  %v212_v47 = vpack.c.bf16 %v188_v41, %v187_v40 }
  0x21   : > { %v204_v45 = vld [vmem:[%s820_s30 + $0xf8] sm:$0xff]  ;;  %v216_v48 = vpack.c.bf16 %v196_v43, %v195_v42 }
  0x22   : > { %v220_v49 = vpack.c.bf16 %v204_v45, %v203_v44 }
  0x29   : > { %518 = vmatmul.msk.bf16.gmra.mxu0 %vm226_vm1, %v206_v22 }
  0x2a   : > { %522 = vmatmul.msk.bf16.gmra.mxu1 %vm226_vm1, %v210_v23 }
  0x2b   : > { %526 = vmatmul.msk.bf16.gmra.mxu2 %vm226_vm1, %v214_v24 }
  0x2c   : > { %530 = vmatmul.msk.bf16.gmra.mxu3 %vm226_vm1, %v218_v25 }
  0x39   : > { %519 = vmatmul.msk.bf16.gmra.mxu0 %vm226_vm1, %v207_v34 }
  0x3a   : > { %523 = vmatmul.msk.bf16.gmra.mxu1 %vm226_vm1, %v211_v35 }
  0x3b   : > { %527 = vmatmul.msk.bf16.gmra.mxu2 %vm226_vm1, %v215_v36 }
  0x3c   : > { %531 = vmatmul.msk.bf16.gmra.mxu3 %vm226_vm1, %v219_v37 }
  0x49   : > { %520 = vmatmul.msk.bf16.gmra.mxu0 %vm226_vm1, %v208_v46 }
  0x4a   : > { %524 = vmatmul.msk.bf16.gmra.mxu1 %vm226_vm1, %v212_v47 }
  0x4b   : > { %528 = vmatmul.msk.bf16.gmra.mxu2 %vm226_vm1, %v216_v48 }
  0x4c   : > { %532 = vmatmul.msk.bf16.gmra.mxu3 %vm226_vm1, %v220_v49 }
  0x96   : > { %v288_v50 = vpop.f32.mrf.mxu0 }
  0x97   : > { %v308_v51 = vpop.f32.mrf.mxu1  ;;  %v289_v56 = vadd.f32 %v874_v52, %v288_v50 }
  0x98   : > { %v309_v59 = vadd.f32 %v874_v52, %v308_v51 }
  0x9e   : > { %v328_v53 = vpop.f32.mrf.mxu2  ;;  %v290_v55 = vpop.f32.mrf.mxu0 }
  0x9f   : > { %v348_v54 = vpop.f32.mrf.mxu3  ;;  %v291_v57 = vadd.f32 %v874_v52, %v290_v55  ;;  %v310_v58 = vpop.f32.mrf.mxu1  ;;  %v329_v0 = vadd.f32 %v874_v52, %v328_v53 }
  0xa0   : > { %v311_v60 = vadd.f32 %v874_v52, %v310_v58  ;;  %v349_v4 = vadd.f32 %v874_v52, %v348_v54 }
  0xa1   : > { %v542_v61 = vpack.c.bf16 %v291_v57, %v289_v56 }
  0xa2   : > { %v562_v62 = vpack.c.bf16 %v311_v60, %v309_v59 }
  0xa3   : > { %543 = vst [vmem:[%s882_s8] sm:$0xff] %v542_v61  }
  0xa4   : > { %622 = vst [vmem:[%s882_s8 + $0x20] sm:$0xff] %v562_v62  }
  0xa6   : > { %v330_v63 = vpop.f32.mrf.mxu2  ;;  %v293_v3 = vpop.f32.mrf.mxu0 }
  0xa7   : > { %v331_v1 = vadd.f32 %v874_v52, %v330_v63  ;;  %v350_v2 = vpop.f32.mrf.mxu3  ;;  %v313_v6 = vpop.f32.mrf.mxu1  ;;  %v294_v12 = vadd.f32 %v874_v52, %v293_v3 }
  0xa8   : > { %v351_v5 = vadd.f32 %v874_v52, %v350_v2  ;;  %v314_v15 = vadd.f32 %v874_v52, %v313_v6 }
  0xa9   : > { %v582_v7 = vpack.c.bf16 %v331_v1, %v329_v0 }
  0xaa   : > { %v602_v8 = vpack.c.bf16 %v351_v5, %v349_v4 }
  0xab   : > { %626 = vst [vmem:[%s882_s8 + $0x40] sm:$0xff] %v582_v7  }
  0xac   : > { %630 = vst [vmem:[%s882_s8 + $0x60] sm:$0xff] %v602_v8  }
  0xae   : > { %v333_v9 = vpop.f32.mrf.mxu2  ;;  %v295_v11 = vpop.f32.mrf.mxu0 }
  0xaf   : > { %v353_v10 = vpop.f32.mrf.mxu3  ;;  %v296_v13 = vadd.f32 %v874_v52, %v295_v11  ;;  %v315_v14 = vpop.f32.mrf.mxu1  ;;  %v334_v20 = vadd.f32 %v874_v52, %v333_v9 }
  0xb0   : > { %v316_v16 = vadd.f32 %v874_v52, %v315_v14  ;;  %v354_v24 = vadd.f32 %v874_v52, %v353_v10 }
  0xb1   : > { %v547_v17 = vpack.c.bf16 %v296_v13, %v294_v12 }
  0xb2   : > { %v567_v18 = vpack.c.bf16 %v316_v16, %v314_v15 }
  0xb3   : > { %619 = vst [vmem:[%s882_s8 + $0x8] sm:$0xff] %v547_v17  }
  0xb4   : > { %623 = vst [vmem:[%s882_s8 + $0x28] sm:$0xff] %v567_v18  }
  0xb6   : > { %v335_v19 = vpop.f32.mrf.mxu2  ;;  %v298_v23 = vpop.f32.mrf.mxu0 }
  0xb7   : > { %v336_v21 = vadd.f32 %v874_v52, %v335_v19  ;;  %v355_v22 = vpop.f32.mrf.mxu3  ;;  %v318_v26 = vpop.f32.mrf.mxu1  ;;  %v299_v32 = vadd.f32 %v874_v52, %v298_v23 }
  0xb8   : > { %v356_v25 = vadd.f32 %v874_v52, %v355_v22  ;;  %v319_v35 = vadd.f32 %v874_v52, %v318_v26 }
  0xb9   : > { %v587_v27 = vpack.c.bf16 %v336_v21, %v334_v20 }
  0xba   : > { %v607_v28 = vpack.c.bf16 %v356_v25, %v354_v24 }
  0xbb   : > { %627 = vst [vmem:[%s882_s8 + $0x48] sm:$0xff] %v587_v27  }
  0xbc   : > { %631 = vst [vmem:[%s882_s8 + $0x68] sm:$0xff] %v607_v28  }
  0xbe   : > { %v338_v29 = vpop.f32.mrf.mxu2  ;;  %v300_v31 = vpop.f32.mrf.mxu0 }
  0xbf   : > { %v358_v30 = vpop.f32.mrf.mxu3  ;;  %v301_v33 = vadd.f32 %v874_v52, %v300_v31  ;;  %v320_v34 = vpop.f32.mrf.mxu1  ;;  %v339_v40 = vadd.f32 %v874_v52, %v338_v29 }
  0xc0   : > { %v321_v36 = vadd.f32 %v874_v52, %v320_v34  ;;  %v359_v44 = vadd.f32 %v874_v52, %v358_v30 }
  0xc1   : > { %v552_v37 = vpack.c.bf16 %v301_v33, %v299_v32 }
  0xc2   : > { %v572_v38 = vpack.c.bf16 %v321_v36, %v319_v35 }
  0xc3   : > { %620 = vst [vmem:[%s882_s8 + $0x10] sm:$0xff] %v552_v37  }
  0xc4   : > { %624 = vst [vmem:[%s882_s8 + $0x30] sm:$0xff] %v572_v38  }
  0xc6   : > { %v340_v39 = vpop.f32.mrf.mxu2  ;;  %v303_v43 = vpop.f32.mrf.mxu0 }
  0xc7   : > { %v341_v41 = vadd.f32 %v874_v52, %v340_v39  ;;  %v360_v42 = vpop.f32.mrf.mxu3  ;;  %v323_v46 = vpop.f32.mrf.mxu1  ;;  %v304_v53 = vadd.f32 %v874_v52, %v303_v43 }
  0xc8   : > { %v361_v45 = vadd.f32 %v874_v52, %v360_v42  ;;  %v324_v56 = vadd.f32 %v874_v52, %v323_v46 }
  0xc9   : > { %v592_v47 = vpack.c.bf16 %v341_v41, %v339_v40 }
  0xca   : > { %v612_v48 = vpack.c.bf16 %v361_v45, %v359_v44 }
  0xcb   : > { %628 = vst [vmem:[%s882_s8 + $0x50] sm:$0xff] %v592_v47  }
  0xcc   : > { %632 = vst [vmem:[%s882_s8 + $0x70] sm:$0xff] %v612_v48  }
  0xce   : > { %v343_v49 = vpop.f32.mrf.mxu2  ;;  %v305_v51 = vpop.f32.mrf.mxu0 }
  0xcf   : > { %v363_v50 = vpop.f32.mrf.mxu3  ;;  %v306_v54 = vadd.f32 %v874_v52, %v305_v51  ;;  %v325_v55 = vpop.f32.mrf.mxu1  ;;  %v344_v61 = vadd.f32 %v874_v52, %v343_v49 }
  0xd0   : > { %v326_v57 = vadd.f32 %v874_v52, %v325_v55  ;;  %v364_v0 = vadd.f32 %v874_v52, %v363_v50 }
  0xd1   : > { %v557_v58 = vpack.c.bf16 %v306_v54, %v304_v53 }
  0xd2   : > { %v577_v59 = vpack.c.bf16 %v326_v57, %v324_v56 }
  0xd3   : > { %621 = vst [vmem:[%s882_s8 + $0x18] sm:$0xff] %v557_v58  }
  0xd4   : > { %625 = vst [vmem:[%s882_s8 + $0x38] sm:$0xff] %v577_v59  }
  0xd6   : > { %v345_v60 = vpop.f32.mrf.mxu2 }
  0xd7   : > { %v346_v62 = vadd.f32 %v874_v52, %v345_v60  ;;  %v365_v63 = vpop.f32.mrf.mxu3 }
  0xd8   : > { %v366_v1 = vadd.f32 %v874_v52, %v365_v63 }
  0xd9   : > { %v597_v2 = vpack.c.bf16 %v346_v62, %v344_v61 }
  0xda   : > { %v617_v3 = vpack.c.bf16 %v366_v1, %v364_v0 }
  0xdb   : > { %629 = vst [vmem:[%s882_s8 + $0x58] sm:$0xff] %v597_v2  }
  0xdc   : > { %633 = vst [vmem:[%s882_s8 + $0x78] sm:$0xff] %v617_v3  }
  0xdd   : > { %706 = shalt.err (!%p703_p3)
}
  0xde   : > { %s743_s4 = smov 64   ;;  %s744_s5 = smov 4  }
  0xdf   : > { %637 = dma.vmem_to_hbm [thread:$0]  (%p803_p5), %s446_s19, 2048, %s448_s20, %s433_s16, %s743_s4, %s743_s4, %s744_s5  }
  0xe0 PF: > { %p643_p4 = scmp.ge.s32.totalorder %s741_s15, 2  ;;  %s462_s6 = sand.u32 1, %s729_s12  }
  0xe1   : > { %s463_s7 = scalar_lea.sflag [#allocation3], %s462_s6 }
  0xe2   : > { %p640_p7 = pnand %p643_p4, %p807_p6 }
  0xe4   : > { %p641_p8 = pneg %p640_p7 }
  0xe6   : > { %724 = dma.done.wait (%p641_p8), %s463_s7, 2048  }
  0xe7   : > { %726 = vsyncadd (%p641_p8), %s463_s7, 4294965248  ;;  %p13_p9 = scmp.ge.s32.totalorder %s790_s18, 4   ;;  %s968_s12 = smov %s733_s13 }
  0xe8   : > { %s969_s13 = smov %s737_s14  ;;  %s970_s14 = smov %s801_s21 }
  0xe9   : > { %s971_s15 = smov %s790_s18  ;;  %15 = sbr.rel (!%p13_p9) target bundleno = 3 (0x3), region = 67 }
  0xee   :  { %469 = vsyncpa [#allocation3], 1 }
  0xef   :  { %471 = vsyncpa [#allocation3 + $0x1], 1 }

</bundles_post_ra>
